<compile_context>
chip_gen: v5e
topology: v5e:2x2
jax: 0.10.0
libtpu: 0.0.40
codegen_flags: <defaults>
</compile_context>

<pallas_src>
import functools

import jax
import jax.numpy as jnp
from jax import lax
from jax.experimental import pallas as pl
from jax.experimental.pallas import tpu as pltpu

_VMEM_LIMIT = 32 * 1024 * 1024      # scoped VMEM limit (v7x-safe)
_VMEM_BUDGET = 24 * 1024 * 1024     # budget used when picking the row tile
_MAX_TM = 512                       # max rows per grid step
_LANE_TARGET = 128                  # want >= one full vreg of output lanes
_MAX_GROUP_W = 512                  # cap on grouped input width (bounds E + MXU work)


def _round_up(a, b):
    return (a + b - 1) // b * b


def _choose_group(h, w, s):
    """Smallest divisor g of H such that the output row (g*s*s*W lanes) is
    lane-dense (>= 128 lanes -> unmasked vst), with g*W capped to bound the
    expansion-matrix size and MXU work."""
    best = 1
    for g in range(1, h + 1):
        if h % g:
            continue
        if g > 1 and g * w > _MAX_GROUP_W:
            break
        best = g
        if g * s * s * w >= _LANE_TARGET:
            break
    return best


def _choose_row_tile(m8, in_w, out_w, itemsize):
    """Sublane-aligned row tile that fits the VMEM budget (double-buffered)."""
    per_row = 2 * in_w * itemsize + 2 * out_w * itemsize
    e_bytes = 2 * in_w * out_w * 2              # bf16 expansion matrix, 2 buffers
    avail = max(_VMEM_BUDGET - e_bytes, per_row * 8)
    tm = max(8, min(_MAX_TM, (avail // per_row) // 8 * 8, m8))
    # Prefer >= 2 grid steps: pipeline overlap + even megacore split on v7x.
    if tm >= m8 and m8 >= 16:
        tm = _round_up((m8 + 1) // 2, 8)
    return tm


@functools.lru_cache(maxsize=None)
def _upsample_call(mp, in_w, out_w, tm, dtype_name):
    """Build (and cache) the pallas_call for one (shape, tile) configuration."""
    dtype = jnp.dtype(dtype_name)

    def kernel(x_ref, e_ref, o_ref):
        e = e_ref[...]                                   # (in_w, out_w) one-hot, bf16
        if dtype == jnp.bfloat16:
            o_ref[...] = jnp.dot(
                x_ref[...], e, preferred_element_type=jnp.float32
            ).astype(o_ref.dtype)
        else:
            # Exact 3-way bf16 split of the f32 rows: x == hi + mid + lo.
            x = x_ref[...].astype(jnp.float32)
            hi = x.astype(jnp.bfloat16)
            r1 = x - hi.astype(jnp.float32)
            mid = r1.astype(jnp.bfloat16)
            r2 = r1 - mid.astype(jnp.float32)
            lo = r2.astype(jnp.bfloat16)
            # Each one-hot dot copies exactly one value per output lane -> exact.
            y = jnp.dot(hi, e, preferred_element_type=jnp.float32)
            y = y + jnp.dot(mid, e, preferred_element_type=jnp.float32)
            y = y + jnp.dot(lo, e, preferred_element_type=jnp.float32)
            o_ref[...] = y.astype(o_ref.dtype)

    return pl.pallas_call(
        kernel,
        out_shape=jax.ShapeDtypeStruct((mp, out_w), dtype),
        grid=(mp // tm,),
        in_specs=[
            pl.BlockSpec((tm, in_w), lambda i: (i, 0)),
            pl.BlockSpec((in_w, out_w), lambda i: (0, 0)),   # grid-invariant: fetched once
        ],
        out_specs=pl.BlockSpec((tm, out_w), lambda i: (i, 0)),
        compiler_params=pltpu.CompilerParams(
            dimension_semantics=("parallel",),
            vmem_limit_bytes=_VMEM_LIMIT,
        ),
    )


@functools.partial(jax.jit, static_argnames=("scale",))
def upsample_nearest(x, scale=2):
    """nn.Upsample(scale_factor=scale, mode='nearest') on an NCHW tensor."""
    s = int(scale)
    b, c, h, w = x.shape
    g = _choose_group(h, w, s)
    mg = (b * c * h) // g            # one "super row" per (b, c, group-of-g-H-rows)
    in_w = g * w
    out_w = g * s * s * w

    x2 = x.reshape(mg, in_w)         # free row-major view

    m8 = _round_up(max(mg, 8), 8)
    itemsize = jnp.dtype(x.dtype).itemsize
    tm = _choose_row_tile(m8, in_w, out_w, itemsize)
    mp = _round_up(m8, tm)
    if mp != mg:
        x2 = jnp.pad(x2, ((0, mp - mg), (0, 0)))

    # One-hot expansion matrix E (in_w, out_w).  With the input super-row
    # viewed as (g, W) = (a, j) and the output super-row as (g, s, W, s)
    # = (a', r, j', k):  E[(a, j), (a', r, j', k)] = 1 iff a' == a and j' == j.
    p = lax.broadcasted_iota(jnp.int32, (in_w, out_w), 0)
    q = lax.broadcasted_iota(jnp.int32, (in_w, out_w), 1)
    a_p, j_p = p // w, p % w
    a_q = q // (s * s * w)
    j_q = (q % (s * w)) // s
    e = ((a_p == a_q) & (j_p == j_q)).astype(jnp.bfloat16)

    out2 = _upsample_call(mp, in_w, out_w, tm, jnp.dtype(x.dtype).name)(x2, e)
    # (M_g, g*s*s*W) is exactly the row-major layout of (B, C, s*H, s*W).
    return out2[:mg].reshape(b, c, s * h, s * w)


if __name__ == "__main__":
    key = jax.random.PRNGKey(0)
    x = jax.random.normal(key, (2, 4, 16, 16), jnp.float32)   # NCHW, like PyTorch

    out = upsample_nearest(x, scale=2)
    out = jax.block_until_ready(out)

    assert out.shape == (2, 4, 32, 32), out.shape
    ref = jnp.repeat(jnp.repeat(x, 2, axis=2), 2, axis=3)     # pure-JAX reference
    assert bool(jnp.allclose(out, ref, rtol=1e-6, atol=1e-6)), "value mismatch"
    assert bool(jnp.all(jnp.isfinite(out)))
    print("KERNEL_OK")
</pallas_src>

<mosaic_0001>
module attributes {stable_mosaic.version = 11 : i64} {
  func.func @kernel(%arg0: i32, %arg1: memref<32x32xf32, #tpu.memory_space<vmem>>, %arg2: memref<32x128xbf16, #tpu.memory_space<vmem>>, %arg3: memref<32x128xf32, #tpu.memory_space<vmem>>) attributes {dimension_semantics = [#tpu.dimension_semantics<parallel>], iteration_bounds = array<i64: 2>, scalar_prefetch = 0 : i64, scratch_operands = 0 : i64, tpu.core_type = #tpu.core_type<tc>, window_params = [{transform_indices = @transform_0, window_bounds = array<i64: 32, 32>}, {pipeline_mode = #tpu.pipeline_mode<synchronous>, transform_indices = @transform_1, window_bounds = array<i64: 32, 128>}, {transform_indices = @transform_2, window_bounds = array<i64: 32, 128>}]} {
    %c0 = arith.constant 0 : index
    %c0_0 = arith.constant 0 : index
    %0 = vector.load %arg2[%c0, %c0_0] : memref<32x128xbf16, #tpu.memory_space<vmem>>, vector<32x128xbf16>
    %c0_1 = arith.constant 0 : index
    %c0_2 = arith.constant 0 : index
    %1 = vector.load %arg1[%c0_1, %c0_2] : memref<32x32xf32, #tpu.memory_space<vmem>>, vector<32x32xf32>
    %2 = arith.truncf %1 : vector<32x32xf32> to vector<32x32xbf16>
    %3 = arith.extf %2 : vector<32x32xbf16> to vector<32x32xf32>
    %4 = arith.subf %1, %3 : vector<32x32xf32>
    %5 = arith.truncf %4 : vector<32x32xf32> to vector<32x32xbf16>
    %6 = arith.extf %5 : vector<32x32xbf16> to vector<32x32xf32>
    %7 = arith.subf %4, %6 : vector<32x32xf32>
    %8 = arith.truncf %7 : vector<32x32xf32> to vector<32x32xbf16>
    %cst = arith.constant dense<0.000000e+00> : vector<32x128xf32>
    %9 = tpu.matmul %2, %0, %cst {dimension_numbers = #tpu.dot_dimension_numbers<[1], [0], [0], [1], [0, 0, 1, 1], [], []>} : vector<32x32xbf16>, vector<32x128xbf16>, vector<32x128xf32> -> vector<32x128xf32>
    %cst_3 = arith.constant dense<0.000000e+00> : vector<32x128xf32>
    %10 = tpu.matmul %5, %0, %cst_3 {dimension_numbers = #tpu.dot_dimension_numbers<[1], [0], [0], [1], [0, 0, 1, 1], [], []>} : vector<32x32xbf16>, vector<32x128xbf16>, vector<32x128xf32> -> vector<32x128xf32>
    %11 = arith.addf %9, %10 : vector<32x128xf32>
    %cst_4 = arith.constant dense<0.000000e+00> : vector<32x128xf32>
    %12 = tpu.matmul %8, %0, %cst_4 {dimension_numbers = #tpu.dot_dimension_numbers<[1], [0], [0], [1], [0, 0, 1, 1], [], []>} : vector<32x32xbf16>, vector<32x128xbf16>, vector<32x128xf32> -> vector<32x128xf32>
    %13 = arith.addf %11, %12 : vector<32x128xf32>
    %c0_5 = arith.constant 0 : index
    %c0_6 = arith.constant 0 : index
    %14 = vector.load %arg3[%c0_5, %c0_6] : memref<32x128xf32, #tpu.memory_space<vmem>>, vector<32x128xf32>
    tpu.vector_store %arg3[%c0_5, %c0_6], %13 {strides = array<i32>} : memref<32x128xf32, #tpu.memory_space<vmem>>, vector<32x128xf32>,
    return
  }
  func.func @transform_0(%arg0: i32) -> (i32, i32) {
    %c0_i32 = arith.constant 0 : i32
    %c0_i32_0 = arith.constant 0 : i32
    return %arg0, %c0_i32 : i32, i32
  }
  func.func @transform_1(%arg0: i32) -> (i32, i32) {
    %c0_i32 = arith.constant 0 : i32
    %c0_i32_0 = arith.constant 0 : i32
    %c0_i32_1 = arith.constant 0 : i32
    return %c0_i32, %c0_i32_0 : i32, i32
  }
  func.func @transform_2(%arg0: i32) -> (i32, i32) {
    %c0_i32 = arith.constant 0 : i32
    %c0_i32_0 = arith.constant 0 : i32
    return %arg0, %c0_i32 : i32, i32
  }
}

</mosaic_0001>

<bundles_post_ra>
// kernel: upsample_nearest.1
= control target key start
LH: loop header
LB: loop body
LE: loop exit
PB: predicated region body
PF: predicated region fallthrough
CT: control target
= control target key end

     0   :  { %s414_s9 = smov 0   ;;  %s450_s0 = inlined_call_operand.vmem [shape: f32[64,32], index: 0, kind: input, shape index: {}]   ;;  %s451_s1 = inlined_call_operand.vmem [shape: bf16[32,128], index: 1, kind: input, shape index: {}]   ;;  %s452_s2 = inlined_call_operand.vmem [shape: f32[64,128], index: 2, kind: output, shape index: {}]  }
   0x1 LB: > { %s354_s10 = sadd.s32 4294967295, %s397_s9   ;;  %p358_p0 = scmp.ge.s32.totalorder %s397_s9, 1  ;;  %s397_s9 = sphi %s414_s9, %s12_s9  }
   0x2   : > { %p113_p1 = scmp.lt.s32.totalorder %s397_s9, 3 }
   0x4   : > { %p114_p2 = pnand %p358_p0, %p113_p1 }
   0x5   : > { %s359_s13 = sshll.u32 (!%p114_p2), %s354_s10, 2 }
   0x6   : > { %117 = sbr.rel (%p114_p2) target bundleno = 188 (0xbc), region = 28  ;;  %p136_p3 = scmp.lt.s32.totalorder (!%p114_p2), %s359_s13, 7 }
   0xb   : > { %v380_v0 = vld [vmem:[%s451_s1 + $0x8] sm:$0xff]  ;;  %v379_v1 = vld [vmem:[%s451_s1] sm:$0xff]  ;;  %s454_s13 = smov (!%p136_p3, %s359_s13), 7  ;;  %vm204_vm0 = vcmask 261120  }
   0xc   : > { %252 = vmatpush.bf16.msra.mxu1 %v380_v0  ;;  %217 = vmatpush.bf16.msra.mxu0 %v380_v0  ;;  %s360_s16 = sshll.u32 %s454_s13, 3 }
   0xd   : > { %277 = vmatpush.bf16.msra.mxu2 %v380_v0  ;;  %381 = vmatpush.bf16.msra.mxu3 %v380_v0  ;;  %s139_s19 = scalar_lea.vmem %s450_s0, %s360_s16  ;;  %s145_s22 = scalar_lea.vmem %s452_s2, %s360_s16 }
   0xe   : > { %v152_v2 = vld [vmem:[%s139_s19] sm:$0xff]  ;;  %v153_v3 = vld [vmem:[%s139_s19 + $0x8] sm:$0xff]  ;;  %v154_v4 = vld [vmem:[%s139_s19 + $0x10] sm:$0xff] }
   0xf   : > { %v156_v5 = vpack.c.bf16 %v152_v2, %v152_v2  ;;  %v157_v6 = vpack.c.bf16 %v153_v3, %v153_v3  ;;  %v155_v7 = vld [vmem:[%s139_s19 + $0x18] sm:$0xff]  ;;  %v158_v8 = vpack.c.bf16 %v154_v4, %v154_v4 }
  0x10   : > { %253 = vmatpush.bf16.msra.mxu1 %v379_v1  ;;  %218 = vmatpush.bf16.msra.mxu0 %v379_v1  ;;  %v159_v9 = vpack.c.bf16 %v155_v7, %v155_v7 }
  0x11   : > { %278 = vmatpush.bf16.msra.mxu2 %v379_v1  ;;  %382 = vmatpush.bf16.msra.mxu3 %v379_v1  ;;  %v160_v10 = vunpack.c.l.bf16 %v156_v5  ;;  %v161_v11 = vunpack.c.l.bf16 %v157_v6  ;;  %v234_v12 = vunpack.c.l.b16 %v156_v5  ;;  %v235_v13 = vunpack.c.l.b16 %v157_v6 }
  0x12   : > { %v162_v14 = vunpack.c.l.bf16 %v158_v8  ;;  %v163_v15 = vunpack.c.l.bf16 %v159_v9  ;;  %v236_v36 = vunpack.c.l.b16 %v158_v8  ;;  %v237_v37 = vunpack.c.l.b16 %v159_v9 }
  0x13   : > { %v238_v16 = vpack.c.b16 %v235_v13, %v234_v12  ;;  %v164_v17 = vsub.f32 %v152_v2, %v160_v10  ;;  %v165_v18 = vsub.f32 %v153_v3, %v161_v11 }
  0x14   : > { %v166_v19 = vsub.f32 %v154_v4, %v162_v14  ;;  %v167_v20 = vsub.f32 %v155_v7, %v163_v15  ;;  %v239_v38 = vpack.c.b16 %v237_v37, %v236_v36 }
  0x15   : > { %373 = vmatmul.msk.bf16.vlgmr.msra.gmra.mxu1 %vm204_vm0, %v238_v16  ;;  %v168_v21 = vpack.c.bf16 %v164_v17, %v164_v17  ;;  %v169_v22 = vpack.c.bf16 %v165_v18, %v165_v18 }
  0x16   : > { %v170_v23 = vpack.c.bf16 %v166_v19, %v166_v19  ;;  %v171_v24 = vpack.c.bf16 %v167_v20, %v167_v20 }
  0x17   : > { %v186_v25 = vunpack.c.l.b16 %v168_v21  ;;  %v187_v26 = vunpack.c.l.b16 %v169_v22  ;;  %v172_v27 = vunpack.c.l.bf16 %v168_v21  ;;  %v173_v28 = vunpack.c.l.bf16 %v169_v22 }
  0x18   : > { %v188_v29 = vunpack.c.l.b16 %v170_v23  ;;  %v189_v30 = vunpack.c.l.b16 %v171_v24  ;;  %v174_v39 = vunpack.c.l.bf16 %v170_v23  ;;  %v175_v40 = vunpack.c.l.bf16 %v171_v24 }
  0x19   : > { %v190_v31 = vpack.c.b16 %v187_v26, %v186_v25  ;;  %v176_v32 = vsub.f32 %v164_v17, %v172_v27  ;;  %v177_v33 = vsub.f32 %v165_v18, %v173_v28 }
  0x1a   : > { %v191_v34 = vpack.c.b16 %v189_v30, %v188_v29  ;;  %v178_v41 = vsub.f32 %v166_v19, %v174_v39  ;;  %v179_v42 = vsub.f32 %v167_v20, %v175_v40 }
  0x1b   : > { %371 = vmatmul.msk.bf16.vlgmr.msra.gmra.mxu0 %vm204_vm0, %v190_v31  ;;  %v180_v35 = vpack.c.bf16 %v177_v33, %v176_v32 }
  0x1c   : > { %372 = vmatmul.msk.bf16.vlgmr.msra.gmra.mxu3 %vm204_vm0, %v191_v34  ;;  %v181_v43 = vpack.c.bf16 %v179_v42, %v178_v41 }
  0x1d   : > { %375 = vmatmul.msk.bf16.vlgmr.msra.gmra.mxu2 %vm204_vm0, %v180_v35 }
  0x25   : > { %374 = vmatmul.msk.bf16.gmra.mxu1 %vm204_vm0, %v239_v38 }
  0x2d   : > { %376 = vmatmul.msk.bf16.gmra.mxu2 %vm204_vm0, %v181_v43 }
  0x92   : > { %v255_v44 = vpop.f32.mrf.mxu1 }
  0x98   : > { %v220_v45 = vpop.f32.mrf.mxu0 }
  0x99   : > { %v256_v46 = vadd.f32 %v255_v44, %v220_v45 }
  0x9a   : > { %v257_v47 = vpop.f32.mrf.mxu1 }
  0x9f   : > { %v225_v54 = vpop.f32.mrf.mxu3 }
  0xa0   : > { %v280_v48 = vpop.f32.mrf.mxu2  ;;  %v222_v50 = vpop.f32.mrf.mxu0 }
  0xa1   : > { %v290_v49 = vadd.f32 %v280_v48, %v256_v46  ;;  %v258_v51 = vadd.f32 %v257_v47, %v222_v50 }
  0xa2   : > { %v260_v55 = vpop.f32.mrf.mxu1 }
  0xa3   : > { %294 = vst [vmem:[%s145_s22] sm:$0xff] %v290_v49  ;;  %v261_v56 = vadd.f32 %v260_v55, %v225_v54 }
  0xa7   : > { %v227_v59 = vpop.f32.mrf.mxu3 }
  0xa8   : > { %v282_v52 = vpop.f32.mrf.mxu2 }
  0xa9   : > { %v291_v53 = vadd.f32 %v282_v52, %v258_v51 }
  0xaa   : > { %v262_v60 = vpop.f32.mrf.mxu1 }
  0xab   : > { %295 = vst [vmem:[%s145_s22 + $0x8] sm:$0xff] %v291_v53  ;;  %v263_v61 = vadd.f32 %v262_v60, %v227_v59 }
  0xb0   : > { %v285_v57 = vpop.f32.mrf.mxu2 }
  0xb1   : > { %v292_v58 = vadd.f32 %v285_v57, %v261_v56 }
  0xb3   : > { %296 = vst [vmem:[%s145_s22 + $0x10] sm:$0xff] %v292_v58 }
  0xb8   : > { %v287_v62 = vpop.f32.mrf.mxu2 }
  0xb9   : > { %v293_v63 = vadd.f32 %v287_v62, %v263_v61 }
  0xbb   : > { %297 = vst [vmem:[%s145_s22 + $0x18] sm:$0xff] %v293_v63 }
  0xbc PF: > { %s12_s9 = sadd.s32 1, %s397_s9  }
  0xbd   : > { %p9_p4 = scmp.ge.s32.totalorder %s12_s9, 4  }
  0xbf   :  { %11 = sbr.rel (!%p9_p4) target bundleno = 1 (0x1), region = 58 }

</bundles_post_ra>
